<compile_context>
chip_gen: v7x
topology: tpu7x:2x2x1
jax: 0.10.0
libtpu: 0.0.40
codegen_flags: <defaults>
</compile_context>

<pallas_src>
import numpy as np

import jax
import jax.numpy as jnp
from jax import lax
from jax.experimental import pallas as pl
from jax.experimental.pallas import tpu as pltpu


# ----------------------------- problem sizes --------------------------------
N = 128      # number of samples (lane axis inside the kernel)
F = 16       # number of features
E = 8        # number of GBDT estimators
D = 3        # oblivious-tree depth
L = 2 ** D   # leaves per tree
LEARNING_RATE = 0.1
PRIOR_P = 0.3  # class prior produced by base_model.init_ (DummyEstimator)
BIAS_LOGIT = float(np.log(PRIOR_P / (1.0 - PRIOR_P)))  # logit(prior), baked in

N_TILE_MAX = 512  # lanes per grid step for production batch sizes


# ------------------------------- kernel -------------------------------------
def gbdt_kernel(x_ref, sel_ref, pr_ref, leafw_ref, out_ref):
    # x_aug: [F+1, Nt] with last row == 1 (samples on lanes -> every
    # intermediate and the output is lane-dense, unmasked vst).
    x = x_ref[...]

    # node[e*D+d] = x[feat(e,d)] - thr(e,d)  (thr folded via the ones row);
    # node[E*D]   = 1  (sentinel row -> bits row of ones for the leaf offset).
    # HIGHEST precision so the '>' compare sees f32-exact values.
    node = jnp.dot(sel_ref[...], x,
                   precision=lax.Precision.HIGHEST,
                   preferred_element_type=jnp.float32)            # [E*D+1, Nt]
    bits = (node > 0.0).astype(jnp.float32)                       # [E*D+1, Nt]

    # code_shift[e*L+l] = path_code[e] - l   (leaf iota folded into pr_aug).
    # Operands are exact small integers in bf16, so default precision is exact.
    code_shift = jnp.dot(pr_ref[...], bits,
                         preferred_element_type=jnp.float32)      # [E*L, Nt]

    # Exact one-hot leaf membership (codes are exact integers).
    onehot = (code_shift == 0.0).astype(jnp.float32)              # [E*L, Nt]

    # Weighted leaf sum on the MXU: [1, E*L] @ [E*L, Nt] -> lane-dense [1, Nt].
    y = jnp.dot(leafw_ref[...], onehot,
                precision=lax.Precision.HIGHEST,
                preferred_element_type=jnp.float32)               # [1, Nt]

    out_ref[...] = jax.nn.sigmoid(y + BIAS_LOGIT).astype(out_ref.dtype)


# ------------------------------- wrapper -------------------------------------
@jax.jit
def simple_gbdt_forward(x, sel_aug, pr_aug, leafw_row):
    n, f = x.shape
    # Layout plumbing only (noise at N=128): feed samples on the lane axis and
    # append the ones row that carries the folded thresholds / leaf offsets.
    # For production callers, hand the kernel x already as [F+1, N].
    x_aug = jnp.concatenate([x.T, jnp.ones((1, n), dtype=x.dtype)], axis=0)

    n_tile = min(n, N_TILE_MAX)          # lane-dense tiles; multiple of 128
    grid = (pl.cdiv(n, n_tile),)

    flops = 2 * n * ((E * D + 1) * (F + 1) + (E * L) * (E * D + 1) + (E * L))
    bytes_accessed = 4 * ((f + 1) * n + sel_aug.size + pr_aug.size
                          + leafw_row.size + n)

    out = pl.pallas_call(
        gbdt_kernel,
        out_shape=jax.ShapeDtypeStruct((1, n), jnp.float32),
        grid_spec=pltpu.PrefetchScalarGridSpec(
            num_scalar_prefetch=0,
            grid=grid,
            in_specs=[
                # x tiles over the lane axis; constants pinned at block (0, 0)
                # so they are DMA'd once and stay resident.
                pl.BlockSpec((f + 1, n_tile), lambda i: (0, i),
                             memory_space=pltpu.MemorySpace.VMEM),
                pl.BlockSpec(sel_aug.shape, lambda i: (0, 0),
                             memory_space=pltpu.MemorySpace.VMEM),
                pl.BlockSpec(pr_aug.shape, lambda i: (0, 0),
                             memory_space=pltpu.MemorySpace.VMEM),
                pl.BlockSpec(leafw_row.shape, lambda i: (0, 0),
                             memory_space=pltpu.MemorySpace.VMEM),
            ],
            out_specs=pl.BlockSpec((1, n_tile), lambda i: (0, i),
                                   memory_space=pltpu.MemorySpace.VMEM),
        ),
        # "parallel" lets v7x split the batch across its two TensorCores;
        # harmless on single-TC v5e/v6e.
        compiler_params=pltpu.CompilerParams(
            dimension_semantics=("parallel",)),
        cost_estimate=pl.CostEstimate(flops=flops, transcendentals=n,
                                      bytes_accessed=bytes_accessed),
    )(x_aug, sel_aug, pr_aug, leafw_row)
    return out.reshape(-1)   # matches torch `out.view(-1)`


# ------------------------ deterministic parameter setup ----------------------
def build_params():
    key = jax.random.PRNGKey(0)
    k_feat, k_thr, k_leaf = jax.random.split(key, 3)

    feat_idx = jax.random.randint(k_feat, (E, D), 0, F)                 # [E, D]
    thr = 0.1 * jax.random.normal(k_thr, (E, D), dtype=jnp.float32)     # [E, D]
    leaf_vals = 0.5 * jax.random.normal(k_leaf, (E, L), dtype=jnp.float32)

    feat_np = np.asarray(feat_idx)
    thr_np = np.asarray(thr)
    leaf_np = np.asarray(leaf_vals)

    # Augmented selector [E*D+1, F+1]:
    #   rows 0..E*D-1 : one-hot(feat) with column F = -thr  (thr folded)
    #   row  E*D      : sentinel -> node == 1 -> bits row of ones
    sel_aug = np.zeros((E * D + 1, F + 1), dtype=np.float32)
    for e in range(E):
        for d in range(D):
            r = e * D + d
            sel_aug[r, feat_np[e, d]] = 1.0
            sel_aug[r, F] = -thr_np[e, d]
    sel_aug[E * D, F] = 1.0

    # Augmented path-code matrix [E*L, E*D+1]:
    #   (e*L + l, e*D + d) = 2^d,  (e*L + l, E*D) = -l   (leaf iota folded)
    pr_aug = np.zeros((E * L, E * D + 1), dtype=np.float32)
    for e in range(E):
        for l in range(L):
            r = e * L + l
            for d in range(D):
                pr_aug[r, e * D + d] = float(2 ** d)
            pr_aug[r, E * D] = -float(l)

    # Leaf values folded with the linear layer (learning-rate weights): [1, E*L]
    leafw_row = (LEARNING_RATE * leaf_np).reshape(1, E * L).astype(np.float32)

    kernel_params = (jnp.asarray(sel_aug), jnp.asarray(pr_aug),
                     jnp.asarray(leafw_row))
    raw_params = (feat_idx, thr, leaf_vals)
    return kernel_params, raw_params


def reference_forward(x, feat_idx, thr, leaf_vals):
    # Exact gather-based oblivious-tree semantics (no matmul rounding).
    n = x.shape[0]
    xv = x[:, feat_idx.reshape(-1)].reshape(n, E, D)                    # [N, E, D]
    bits = (xv > thr[None, :, :]).astype(jnp.int32)
    codes = jnp.sum(bits * (2 ** jnp.arange(D))[None, None, :], axis=-1)  # [N, E]
    preds = leaf_vals[jnp.arange(E)[None, :], codes]                    # [N, E]
    y = LEARNING_RATE * jnp.sum(preds, axis=-1) + BIAS_LOGIT
    return jax.nn.sigmoid(y)


# --------------------------------- main --------------------------------------
if __name__ == "__main__":
    (sel_aug, pr_aug, leafw_row), (feat_idx, thr, leaf_vals) = build_params()
    x = jax.random.normal(jax.random.PRNGKey(0), (N, F), dtype=jnp.float32)

    out = simple_gbdt_forward(x, sel_aug, pr_aug, leafw_row)
    out = jax.block_until_ready(out)

    ref = reference_forward(x, feat_idx, thr, leaf_vals)
    assert out.shape == (N,)
    assert jnp.allclose(out, ref, atol=1e-5, rtol=1e-5), "mismatch vs JAX reference"

    print("KERNEL_OK")
</pallas_src>

<mosaic_0001>
module attributes {stable_mosaic.version = 11 : i64} {
  func.func @gbdt_kernel(%arg0: i32, %arg1: memref<17x128xf32, #tpu.memory_space<vmem>>, %arg2: memref<25x17xf32, #tpu.memory_space<vmem>>, %arg3: memref<64x25xf32, #tpu.memory_space<vmem>>, %arg4: memref<1x64xf32, #tpu.memory_space<vmem>>, %arg5: memref<1x128xf32, #tpu.memory_space<vmem>>) attributes {dimension_semantics = [#tpu.dimension_semantics<parallel>], iteration_bounds = array<i64: 1>, scalar_prefetch = 0 : i64, scratch_operands = 0 : i64, tpu.core_type = #tpu.core_type<tc>, window_params = [{transform_indices = @transform_0, window_bounds = array<i64: 17, 128>}, {pipeline_mode = #tpu.pipeline_mode<synchronous>, transform_indices = @transform_1, window_bounds = array<i64: 25, 17>}, {pipeline_mode = #tpu.pipeline_mode<synchronous>, transform_indices = @transform_2, window_bounds = array<i64: 64, 25>}, {pipeline_mode = #tpu.pipeline_mode<synchronous>, transform_indices = @transform_3, window_bounds = array<i64: 1, 64>}, {transform_indices = @transform_4, window_bounds = array<i64: 1, 128>}]} {
    %c0 = arith.constant 0 : index
    %c0_0 = arith.constant 0 : index
    %0 = vector.load %arg1[%c0, %c0_0] : memref<17x128xf32, #tpu.memory_space<vmem>>, vector<17x128xf32>
    %c0_1 = arith.constant 0 : index
    %c0_2 = arith.constant 0 : index
    %1 = vector.load %arg2[%c0_1, %c0_2] : memref<25x17xf32, #tpu.memory_space<vmem>>, vector<25x17xf32>
    %cst = arith.constant dense<0.000000e+00> : vector<25x128xf32>
    %2 = tpu.matmul %1, %0, %cst {dimension_numbers = #tpu.dot_dimension_numbers<[1], [0], [0], [1], [0, 0, 1, 1], [], []>, precision = #tpu.contract_precision<fp32>} : vector<25x17xf32>, vector<17x128xf32>, vector<25x128xf32> -> vector<25x128xf32>
    %cst_3 = arith.constant 0.000000e+00 : f32
    %3 = vector.broadcast %cst_3 : f32 to vector<25x128xf32>
    %4 = arith.cmpf ogt, %2, %3 : vector<25x128xf32>
    %5 = arith.extui %4 : vector<25x128xi1> to vector<25x128xi32>
    %6 = arith.sitofp %5 : vector<25x128xi32> to vector<25x128xf32>
    %c0_4 = arith.constant 0 : index
    %c0_5 = arith.constant 0 : index
    %7 = vector.load %arg3[%c0_4, %c0_5] : memref<64x25xf32, #tpu.memory_space<vmem>>, vector<64x25xf32>
    %cst_6 = arith.constant dense<0.000000e+00> : vector<64x128xf32>
    %8 = tpu.matmul %7, %6, %cst_6 {dimension_numbers = #tpu.dot_dimension_numbers<[1], [0], [0], [1], [0, 0, 1, 1], [], []>} : vector<64x25xf32>, vector<25x128xf32>, vector<64x128xf32> -> vector<64x128xf32>
    %cst_7 = arith.constant 0.000000e+00 : f32
    %9 = vector.broadcast %cst_7 : f32 to vector<64x128xf32>
    %10 = arith.cmpf oeq, %8, %9 : vector<64x128xf32>
    %11 = arith.extui %10 : vector<64x128xi1> to vector<64x128xi32>
    %12 = arith.sitofp %11 : vector<64x128xi32> to vector<64x128xf32>
    %c0_8 = arith.constant 0 : index
    %c0_9 = arith.constant 0 : index
    %13 = vector.load %arg4[%c0_8, %c0_9] : memref<1x64xf32, #tpu.memory_space<vmem>>, vector<1x64xf32>
    %cst_10 = arith.constant dense<0.000000e+00> : vector<1x128xf32>
    %14 = tpu.matmul %13, %12, %cst_10 {dimension_numbers = #tpu.dot_dimension_numbers<[1], [0], [0], [1], [0, 0, 1, 1], [], []>, precision = #tpu.contract_precision<fp32>} : vector<1x64xf32>, vector<64x128xf32>, vector<1x128xf32> -> vector<1x128xf32>
    %cst_11 = arith.constant -0.847297847 : f32
    %15 = vector.broadcast %cst_11 : f32 to vector<1x128xf32>
    %16 = arith.addf %14, %15 : vector<1x128xf32>
    %17 = arith.negf %16 : vector<1x128xf32>
    %18 = math.exp %17 : vector<1x128xf32>
    %cst_12 = arith.constant 1.000000e+00 : f32
    %19 = vector.broadcast %cst_12 : f32 to vector<1x128xf32>
    %20 = arith.addf %19, %18 : vector<1x128xf32>
    %21 = arith.divf %19, %20 : vector<1x128xf32>
    %c0_13 = arith.constant 0 : index
    %c0_14 = arith.constant 0 : index
    %22 = vector.load %arg5[%c0_13, %c0_14] : memref<1x128xf32, #tpu.memory_space<vmem>>, vector<1x128xf32>
    tpu.vector_store %arg5[%c0_13, %c0_14], %21 {strides = array<i32>} : memref<1x128xf32, #tpu.memory_space<vmem>>, vector<1x128xf32>,
    return
  }
  func.func @transform_0(%arg0: i32) -> (i32, i32) {
    %c0_i32 = arith.constant 0 : i32
    %c0_i32_0 = arith.constant 0 : i32
    return %c0_i32, %arg0 : i32, i32
  }
  func.func @transform_1(%arg0: i32) -> (i32, i32) {
    %c0_i32 = arith.constant 0 : i32
    %c0_i32_0 = arith.constant 0 : i32
    %c0_i32_1 = arith.constant 0 : i32
    return %c0_i32, %c0_i32_0 : i32, i32
  }
  func.func @transform_2(%arg0: i32) -> (i32, i32) {
    %c0_i32 = arith.constant 0 : i32
    %c0_i32_0 = arith.constant 0 : i32
    %c0_i32_1 = arith.constant 0 : i32
    return %c0_i32, %c0_i32_0 : i32, i32
  }
  func.func @transform_3(%arg0: i32) -> (i32, i32) {
    %c0_i32 = arith.constant 0 : i32
    %c0_i32_0 = arith.constant 0 : i32
    %c0_i32_1 = arith.constant 0 : i32
    return %c0_i32, %c0_i32_0 : i32, i32
  }
  func.func @transform_4(%arg0: i32) -> (i32, i32) {
    %c0_i32 = arith.constant 0 : i32
    %c0_i32_0 = arith.constant 0 : i32
    return %c0_i32, %arg0 : i32, i32
  }
}

</mosaic_0001>

<bundles_post_ra>
// kernel: simple_gbdt_forward.1
= control target key start
LH: loop header
LB: loop body
LE: loop exit
PB: predicated region body
PF: predicated region fallthrough
CT: control target
= control target key end

     0   :  { %vm38_vm0 = vcmask 1040384   ;;  %vm25_vm1 = vcmask 138240   ;;  %s2182_s0 = inlined_call_operand.vmem [shape: f32[17,128], index: 0, kind: input, shape index: {}]   ;;  %s2183_s1 = inlined_call_operand.vmem [shape: f32[25,17], index: 1, kind: input, shape index: {}]   ;;  %s2184_s2 = inlined_call_operand.vmem [shape: f32[64,25], index: 2, kind: input, shape index: {}]   ;;  %s2185_s3 = inlined_call_operand.vmem [shape: f32[1,64], index: 3, kind: input, shape index: {}]   ;;  %s2186_s4 = inlined_call_operand.hbm [shape: f32[1,128], index: 4, kind: output, shape index: {}]  }
   0x1   :  { %v18_v0 = vld [vmem:[%s2182_s0] sm:$0xff]  ;;  %v19_v1 = vld [vmem:[%s2182_s0 + $0x8] sm:$0xff]  ;;  %v20_v2 = vld [vmem:[%s2182_s0 + $0x10] sm:$0x1] }
   0x2   :  { %v43_v3 = vand.u32 4294901760, %v18_v0  ;;  %v46_v4 = vand.u32 4294901760, %v19_v1  ;;  %v40_v5 = vsel %vm38_vm0, %v20_v2, 0  ;;  %v21_v6 = vld [vmem:[%s2183_s1] sm:$0xff]  ;;  %v22_v7 = vld [vmem:[%s2183_s1 + $0x8] sm:$0xff]  ;;  %v23_v8 = vld [vmem:[%s2183_s1 + $0x10] sm:$0xff] }
   0x3   :  { %v1966_v9 = vand.u32 4294901760, %v40_v5  ;;  %v27_v10 = vsel %vm25_vm1, %v21_v6, 0  ;;  %v30_v11 = vsel %vm25_vm1, %v22_v7, 0  ;;  %v33_v12 = vsel %vm25_vm1, %v23_v8, 0  ;;  %v24_v13 = vld [vmem:[%s2183_s1 + $0x18] sm:$0x1] }
   0x4   :  { %v1974_v14 = vpack.c.bf16 %v46_v4, %v43_v3  ;;  %v1976_v15 = vand.u32 4294901760, %v27_v10  ;;  %v1978_v16 = vand.u32 4294901760, %v30_v11  ;;  %v152_v17 = vsub.f32 %v18_v0, %v43_v3 }
   0x5   :  { %9 = vsyncpa [#allocation3], 0  ;;  %v159_v18 = vsub.f32 %v19_v1, %v46_v4  ;;  %v1980_v19 = vand.u32 4294901760, %v33_v12  ;;  %v36_v20 = vsel %vm25_vm1, %v24_v13, 0  ;;  %v166_v21 = vsub.f32 %v40_v5, %v1966_v9  ;;  %v655_v51 = vld [vmem:[%s2184_s2] sm:$0xff]  ;;  %v656_v61 = vld [vmem:[%s2184_s2 + $0x8] sm:$0xff] }
   0x6   :  { %1747 = vmatprep.subr.bf16.mxu0 %v1974_v14  ;;  %v111_v22 = vsub.f32 %v27_v10, %v1976_v15  ;;  %v121_v23 = vsub.f32 %v30_v11, %v1978_v16  ;;  %v153_v24 = vand.u32 4294901760, %v152_v17  ;;  %v1987_v25 = vand.u32 4294901760, %v36_v20  ;;  %v657_v62 = vld [vmem:[%s2184_s2 + $0x10] sm:$0xff]  ;;  %v658_v63 = vld [vmem:[%s2184_s2 + $0x18] sm:$0xff]  ;;  %v659_v0 = vld [vmem:[%s2184_s2 + $0x20] sm:$0xff] }
   0x7   :  { %1749 = vmatpush3.bf16.msra.mxu0 %v1974_v14  ;;  %v160_v26 = vand.u32 4294901760, %v159_v18  ;;  %v131_v27 = vsub.f32 %v33_v12, %v1980_v19  ;;  %v167_v28 = vand.u32 4294901760, %v166_v21  ;;  %v1754_v49 = vpack.c.bf16 %v159_v18, %v152_v17  ;;  %v660_v1 = vld [vmem:[%s2184_s2 + $0x28] sm:$0xff]  ;;  %v661_v2 = vld [vmem:[%s2184_s2 + $0x30] sm:$0xff]  ;;  %v662_v3 = vld [vmem:[%s2184_s2 + $0x38] sm:$0xff]  ;;  %s1921_s2 = smov [#allocation2]  }
   0x8   :  { %1544 = vmatprep.subr.mxu0 %v1966_v9  ;;  %v112_v29 = vand.u32 4294901760, %v111_v22  ;;  %v122_v30 = vand.u32 4294901760, %v121_v23  ;;  %v154_v31 = vsub.f32 %v152_v17, %v153_v24  ;;  %v141_v32 = vsub.f32 %v36_v20, %v1987_v25  ;;  %v820_v5 = vld [vmem:[%s2185_s3] sm:$0x1]  ;;  %s1375_s3 = sshll.u32 %s1921_s2, 4  ;;  %s1376_s3 = int_to_ptr.vmem [resolvable:$true] %s1375_s3 }
   0x9   :  { %v161_v33 = vsub.f32 %v159_v18, %v160_v26  ;;  %v132_v34 = vand.u32 4294901760, %v131_v27  ;;  %v168_v35 = vsub.f32 %v166_v21, %v167_v28  ;;  %v1762_v50 = vpack.c.bf16 %v160_v26, %v153_v24  ;;  %s1892_s19 = scalar_lea.vmem %s1376_s3, 16  ;;  %s1896_s20 = scalar_lea.vmem %s1376_s3, 32 }
   0xa   :  { %v113_v36 = vsub.f32 %v111_v22, %v112_v29  ;;  %v123_v37 = vsub.f32 %v121_v23, %v122_v30  ;;  %v155_v38 = vand.u32 4294901760, %v154_v31  ;;  %v142_v39 = vand.u32 4294901760, %v141_v32  ;;  %p1893_p0 = scmp.ne.s32.totalorder %s1376_s3, %s1892_s19  ;;  %p1897_p1 = scmp.lt.s32.totalorder %s1376_s3, %s1376_s3 }
   0xb   :  { %1545 = vmatpush3.msra.mxu0 %v1966_v9  ;;  %v162_v40 = vand.u32 4294901760, %v161_v33  ;;  %v133_v41 = vsub.f32 %v131_v27, %v132_v34  ;;  %v169_v47 = vand.u32 4294901760, %v168_v35  ;;  %vm663_vm2 = vcmask 203776   ;;  %p1898_p2 = scmp.lt.s32.totalorder %s1896_s20, %s1892_s19 }
   0xc   :  { %v114_v42 = vand.u32 4294901760, %v113_v36  ;;  %v124_v43 = vand.u32 4294901760, %v123_v37  ;;  %v143_v44 = vsub.f32 %v141_v32, %v142_v39  ;;  %1620 = vmatprep.mubr.msk.f32.mxu1 %vm663_vm2, %v655_v51  ;;  %v1916_v55 = vmov 1.0|1.0  }
   0xd   :  { %v1750_v45 = vpack.c.bf16 %v162_v40, %v155_v38  ;;  %v134_v46 = vand.u32 4294901760, %v133_v41  ;;  %v1917_v57 = vmov 0.0   ;;  %v1918_v59 = vmov 1.0   ;;  %p1899_p3 = por %p1898_p2, %p1897_p1 }
   0xe   :  { %1546 = vmatprep.mubr.f32.mxu0 %v114_v42  ;;  %v144_v48 = vand.u32 4294901760, %v143_v44  ;;  %v1919_v4 = vmov 0.0|0.0   ;;  %vm1920_vm9 = vmmov 0   ;;  %vm821_vm10 = vcmask 523264  }
   0xf   :  { %1547 = vmatmul.mubr.f32.vlgmr.msra.gmra.mrb[0].mxu0 %v124_v43  ;;  %1751 = vmatprep.subr.bf16.mxu0 %v1750_v45  ;;  %v823_v6 = vsel %vm821_vm10, %v820_v5, 0  ;;  %p1900_p4 = pnand %p1899_p3, %p1893_p0 }
  0x10   :  { %1753 = vmatpush3.bf16.msra.mxu0 %v1750_v45  ;;  %1549 = vmatprep.mubr.f32.mxu0 %v134_v46  ;;  %v2059_v7 = vand.u32 4294901760, %v823_v6 }
  0x11   :  { %1556 = vmatprep.subr.mxu0 %v169_v47 }
  0x13   :  { %1550 = vmatmul.mubr.f32.gmra.mrb[2].mxu0 %v144_v48 }
  0x14   :  { %1557 = vmatpush3.msra.mxu0 %v169_v47  ;;  %1558 = vmatprep.mubr.f32.mxu0 %v1976_v15 }
  0x15   :  { %1755 = vmatprep.subr.bf16.mxu0 %v1754_v49 }
  0x17   :  { %1559 = vmatmul.mubr.f32.vlgmr.msra.gmra.mrb[0].mxu0 %v1978_v16 }
  0x18   :  { %1757 = vmatpush3.bf16.msra.mxu0 %v1754_v49  ;;  %1561 = vmatprep.mubr.f32.mxu0 %v1980_v19 }
  0x19   :  { %1568 = vmatprep.subr.mxu0 %v166_v21 }
  0x1b   :  { %1562 = vmatmul.mubr.f32.gmra.mrb[2].mxu0 %v1987_v25 }
  0x1c   :  { %1569 = vmatpush3.msra.mxu0 %v166_v21  ;;  %1570 = vmatprep.mubr.f32.mxu0 %v111_v22 }
  0x1d   :  { %1759 = vmatprep.subr.bf16.mxu0 %v1974_v14 }
  0x1f   :  { %1571 = vmatmul.mubr.f32.vlgmr.msra.gmra.mrb[0].mxu0 %v121_v23 }
  0x20   :  { %1761 = vmatpush3.bf16.msra.mxu0 %v1974_v14  ;;  %1573 = vmatprep.mubr.f32.mxu0 %v131_v27 }
  0x21   :  { %1580 = vmatprep.subr.mxu0 %v1966_v9 }
  0x23   :  { %1574 = vmatmul.mubr.f32.gmra.mrb[2].mxu0 %v141_v32 }
  0x24   :  { %1581 = vmatpush3.msra.mxu0 %v1966_v9  ;;  %1582 = vmatprep.mubr.f32.mxu0 %v112_v29 }
  0x25   :  { %1763 = vmatprep.subr.bf16.mxu0 %v1762_v50 }
  0x27   :  { %1583 = vmatmul.mubr.f32.vlgmr.msra.gmra.mrb[0].mxu0 %v122_v30 }
  0x28   :  { %1765 = vmatpush3.bf16.msra.mxu0 %v1762_v50  ;;  %1585 = vmatprep.mubr.f32.mxu0 %v132_v34 }
  0x29   :  { %1592 = vmatprep.subr.mxu0 %v167_v28 }
  0x2b   :  { %1586 = vmatmul.mubr.f32.gmra.mrb[2].mxu0 %v142_v39 }
  0x2c   :  { %1593 = vmatpush3.msra.mxu0 %v167_v28  ;;  %1594 = vmatprep.mubr.f32.mxu0 %v1976_v15 }
  0x2d   :  { %1767 = vmatprep.subr.bf16.mxu0 %v1974_v14 }
  0x2f   :  { %1595 = vmatmul.mubr.f32.vlgmr.msra.gmra.mrb[0].mxu0 %v1978_v16 }
  0x30   :  { %1769 = vmatpush3.bf16.msra.mxu0 %v1974_v14  ;;  %1597 = vmatprep.mubr.f32.mxu0 %v1980_v19  ;;  %v2068_v14 = vsub.f32 %v823_v6, %v2059_v7 }
  0x31   :  { %1604 = vmatprep.subr.mxu0 %v1966_v9 }
  0x32   :  { %v900_v26 = vand.u32 4294901760, %v2068_v14 }
  0x33   :  { %1598 = vmatmul.mubr.f32.gmra.mrb[2].mxu0 %v1987_v25 }
  0x34   :  { %1605 = vmatpush3.msra.mxu0 %v1966_v9  ;;  %1606 = vmatprep.mubr.f32.mxu0 %v1976_v15  ;;  %v901_v40 = vsub.f32 %v2068_v14, %v900_v26 }
  0x35   :  { %1780 = vmatprep.subr.bf16.mxu0 %v1919_v4 }
  0x37   :  { %1607 = vmatmul.mubr.f32.vlgmr.msra.gmra.mrb[0].mxu0 %v1978_v16 }
  0x38   :  { %1609 = vmatprep.mubr.f32.mxu0 %v1980_v19 }
  0x3b   :  { %1610 = vmatmul.mubr.f32.gmra.mrb[2].mxu0 %v1987_v25 }
  0x3c   :  { %1648 = vmatprep.mubr.msk.f32.mxu0 %vm1920_vm9, %v1917_v57 }
 0x10a   :  { %v1608_v52 = vpop.f32.mrb[0].mxu0 }
 0x10b   :  { %vm644_vm3 = vcmp.gt.f32.partialorder %v1608_v52, 0.0  ;;  %v621_v53 = vpop.f32.mrb[1].mxu0 }
 0x10c   :  { %vm643_vm4 = vcmp.gt.f32.partialorder %v621_v53, 0.0 }
 0x10d   :  { %vm1770_vm5 = vmpackc.low %vm644_vm3, %vm643_vm4 }
 0x10e   :  { %v1611_v54 = vpop.f32.mrb[2].mxu0  ;;  %1771 = vmatprep.subr.msk.bf16.mxu1 %vm1770_vm5, %v1916_v55 }
 0x10f   :  { %vm646_vm6 = vcmp.gt.f32.partialorder %v1611_v54, 0.0  ;;  %v633_v56 = vpop.f32.mrb[3].mxu0  ;;  %1773 = vmatpush3.bf16.msk.msra.mxu1 %vm1770_vm5, %v1916_v55 }
 0x110   :  { %v1386_v58 = vsel %vm646_vm6, 1.0, %v1917_v57  ;;  %vm645_vm7 = vcmp.gt.f32.partialorder %v633_v56, 0.0 }
 0x111   :  { %v1774_v60 = vpack.c.bf16 %v1386_v58, %v1918_v59  ;;  %vm1775_vm8 = vmpackc.low %vm38_vm0, %vm645_vm7 }
 0x113   :  { %1776 = vmatprep.subr.msk.bf16.mxu1 %vm1775_vm8, %v1774_v60 }
 0x114   :  { %1779 = vmatpush3.bf16.msk.msra.mxu1 %vm1775_vm8, %v1774_v60 }
 0x115   :  { %1804 = vmatprep.subr.bf16.mxu1 %v1919_v4 }
 0x117   :  { %1621 = vmatmul.mubr.msk.f32.vlgmr.msra.gmra.mrb[0].mxu1 %vm663_vm2, %v656_v61  ;;  %v902_v61 = vand.u32 4294901760, %v901_v40 }
 0x118   :  { %1623 = vmatprep.mubr.msk.f32.mxu1 %vm663_vm2, %v657_v62 }
 0x11b   :  { %1624 = vmatmul.mubr.msk.f32.gmra.mrb[2].mxu1 %vm663_vm2, %v658_v63 }
 0x11c   :  { %1626 = vmatprep.mubr.msk.f32.mxu1 %vm663_vm2, %v659_v0 }
 0x11f   :  { %1627 = vmatmul.mubr.msk.f32.gmra.mrb[4].mxu1 %vm663_vm2, %v660_v1 }
 0x120   :  { %1629 = vmatprep.mubr.msk.f32.mxu1 %vm663_vm2, %v661_v2 }
 0x123   :  { %1630 = vmatmul.mubr.msk.f32.gmra.mrb[6].mxu1 %vm663_vm2, %v662_v3 }
 0x124   :  { %1686 = vmatprep.mubr.msk.f32.mxu1 %vm1920_vm9, %v1917_v57 }
 0x1ea   :  { %v1622_v8 = vpop.f32.mrb[0].mxu1 }
 0x1eb   :  { %vm797_vm11 = vcmp.eq.f32.partialorder %v1622_v8, 0.0  ;;  %v757_v9 = vpop.f32.mrb[1].mxu1 }
 0x1ec   :  { %v1400_v10 = vsel %vm797_vm11, 1.0, %v1917_v57  ;;  %vm796_vm12 = vcmp.eq.f32.partialorder %v757_v9, 0.0 }
 0x1ed   :  { %v917_v11 = vsub.f32 %v1400_v10, %v1400_v10  ;;  %v1399_v12 = vsel %vm796_vm12, 1.0, %v1917_v57  ;;  %vm2063_vm13 = vmpackc.low %vm797_vm11, %vm796_vm12 }
 0x1ee   :  { %v910_v15 = vsub.f32 %v1399_v12, %v1399_v12  ;;  %v1625_v16 = vpop.f32.mrb[2].mxu1  ;;  %1782 = vmatpush3.bf16.msk.msra.mxu0 %vm2063_vm13, %v1916_v55 }
 0x1ef   :  { %v918_v17 = vand.u32 4294901760, %v917_v11  ;;  %vm799_vm14 = vcmp.eq.f32.partialorder %v1625_v16, 0.0  ;;  %v767_v18 = vpop.f32.mrb[3].mxu1  ;;  %1783 = vmatprep.subr.bf16.mxu0 %v1919_v4 }
 0x1f0   :  { %v911_v19 = vand.u32 4294901760, %v910_v15  ;;  %v1805_v20 = vpack.c.bf16 %v917_v11, %v910_v15  ;;  %v1402_v21 = vsel %vm799_vm14, 1.0, %v1917_v57  ;;  %vm798_vm15 = vcmp.eq.f32.partialorder %v767_v18, 0.0 }
 0x1f1   :  { %v919_v22 = vsub.f32 %v917_v11, %v918_v17  ;;  %v931_v23 = vsub.f32 %v1402_v21, %v1402_v21  ;;  %v1401_v24 = vsel %vm798_vm15, 1.0, %v1917_v57  ;;  %vm2076_vm0 = vmpackc.low %vm799_vm14, %vm798_vm15 }
 0x1f2   :  { %v912_v27 = vsub.f32 %v910_v15, %v911_v19  ;;  %v924_v28 = vsub.f32 %v1401_v24, %v1401_v24  ;;  %v1628_v29 = vpop.f32.mrb[4].mxu1  ;;  %1785 = vmatpush3.bf16.msk.msra.mxu0 %vm2076_vm0, %v1916_v55  ;;  %1806 = vmatpush3.bf16.msra.mxu1 %v1805_v20  ;;  %v2084_v30 = vpack.c.bf16 %v918_v17, %v911_v19 }
 0x1f3   :  { %v920_v31 = vand.u32 4294901760, %v919_v22  ;;  %v932_v32 = vand.u32 4294901760, %v931_v23  ;;  %vm801_vm1 = vcmp.eq.f32.partialorder %v1628_v29, 0.0  ;;  %v777_v33 = vpop.f32.mrb[5].mxu1  ;;  %1786 = vmatprep.subr.bf16.mxu0 %v1919_v4  ;;  %1807 = vmatprep.subr.bf16.mxu1 %v1919_v4 }
 0x1f4   :  { %v913_v34 = vand.u32 4294901760, %v912_v27  ;;  %v925_v35 = vand.u32 4294901760, %v924_v28  ;;  %v1808_v36 = vpack.c.bf16 %v931_v23, %v924_v28  ;;  %v1404_v37 = vsel %vm801_vm1, 1.0, %v1917_v57 }
 0x1f5   :  { %v933_v38 = vsub.f32 %v931_v23, %v932_v32  ;;  %v945_v39 = vsub.f32 %v1404_v37, %v1404_v37  ;;  %vm800_vm2 = vcmp.eq.f32.partialorder %v777_v33, 0.0 }
 0x1f6   :  { %v926_v41 = vsub.f32 %v924_v28, %v925_v35  ;;  %v1403_v42 = vsel %vm800_vm2, 1.0, %v1917_v57  ;;  %vm2093_vm3 = vmpackc.low %vm801_vm1, %vm800_vm2  ;;  %v1631_v44 = vpop.f32.mrb[6].mxu1  ;;  %1809 = vmatpush3.bf16.msra.mxu1 %v1808_v36  ;;  %v1793_v45 = vpack.c.bf16 %v920_v31, %v913_v34  ;;  %v2097_v46 = vpack.c.bf16 %v932_v32, %v925_v35 }
 0x1f7   :  { %v934_v47 = vand.u32 4294901760, %v933_v38  ;;  %v946_v48 = vand.u32 4294901760, %v945_v39  ;;  %v938_v49 = vsub.f32 %v1403_v42, %v1403_v42  ;;  %vm803_vm4 = vcmp.eq.f32.partialorder %v1631_v44, 0.0  ;;  %1788 = vmatpush3.bf16.msk.msra.mxu0 %vm2093_vm3, %v1916_v55  ;;  %v787_v50 = vpop.f32.mrb[7].mxu1  ;;  %1810 = vmatprep.subr.bf16.mxu1 %v1919_v4 }
 0x1f8   :  { %v927_v51 = vand.u32 4294901760, %v926_v41  ;;  %v1406_v52 = vsel %vm803_vm4, 1.0, %v1917_v57  ;;  %vm802_vm5 = vcmp.eq.f32.partialorder %v787_v50, 0.0  ;;  %1789 = vmatprep.subr.bf16.mxu0 %v1919_v4 }
 0x1f9   :  { %v947_v53 = vsub.f32 %v945_v39, %v946_v48  ;;  %v939_v54 = vand.u32 4294901760, %v938_v49  ;;  %v1811_v56 = vpack.c.bf16 %v945_v39, %v938_v49  ;;  %v959_v58 = vsub.f32 %v1406_v52, %v1406_v52  ;;  %vm2105_vm6 = vmpackc.low %vm803_vm4, %vm802_vm5 }
 0x1fa   :  { %v1405_v60 = vsel %vm802_vm5, 1.0, %v1917_v57  ;;  %v1796_v62 = vpack.c.bf16 %v934_v47, %v927_v51 }
 0x1fb   :  { %v948_v63 = vand.u32 4294901760, %v947_v53  ;;  %v940_v0 = vsub.f32 %v938_v49, %v939_v54  ;;  %v960_v1 = vand.u32 4294901760, %v959_v58  ;;  %v952_v2 = vsub.f32 %v1405_v60, %v1405_v60  ;;  %1791 = vmatpush3.bf16.msk.msra.mxu0 %vm2105_vm6, %v1916_v55  ;;  %1812 = vmatpush3.bf16.msra.mxu1 %v1811_v56 }
 0x1fc   :  { %1792 = vmatprep.subr.bf16.mxu0 %v1919_v4  ;;  %1813 = vmatprep.subr.bf16.mxu1 %v1919_v4  ;;  %v1835_v3 = vpack.c.bf16 %v946_v48, %v939_v54 }
 0x1fd   :  { %v941_v5 = vand.u32 4294901760, %v940_v0  ;;  %v961_v6 = vsub.f32 %v959_v58, %v960_v1  ;;  %v953_v8 = vand.u32 4294901760, %v952_v2  ;;  %v1814_v9 = vpack.c.bf16 %v959_v58, %v952_v2 }
 0x1fe   :  { %1649 = vmatmul.mubr.f32.vlgmr.msra.gmra.mrb[4].mxu0 %v902_v61 }
 0x1ff   :  { %v962_v10 = vand.u32 4294901760, %v961_v6  ;;  %v954_v11 = vsub.f32 %v952_v2, %v953_v8  ;;  %1794 = vmatpush3.bf16.msra.mxu0 %v1793_v45  ;;  %1815 = vmatpush3.bf16.msra.mxu1 %v1814_v9  ;;  %v1799_v12 = vpack.c.bf16 %v948_v63, %v941_v5  ;;  %v1838_v15 = vpack.c.bf16 %v960_v1, %v953_v8 }
 0x200   :  { %1795 = vmatprep.subr.bf16.mxu0 %v1919_v4  ;;  %1816 = vmatprep.subr.bf16.mxu1 %v1919_v4 }
 0x201   :  { %v955_v16 = vand.u32 4294901760, %v954_v11  ;;  %1667 = vmatprep.mubr.msk.f32.mxu0 %vm1920_vm9, %v1917_v57 }
 0x202   :  { %1687 = vmatmul.mubr.f32.vlgmr.msra.gmra.mrb[8].mxu1 %v2068_v14 }
 0x203   :  { %1797 = vmatpush3.bf16.msra.mxu0 %v1796_v62  ;;  %1818 = vmatpush3.bf16.msk.msra.mxu1 %vm2063_vm13, %v1916_v55  ;;  %v1802_v17 = vpack.c.bf16 %v962_v10, %v955_v16 }
 0x204   :  { %1798 = vmatprep.subr.bf16.mxu0 %v1919_v4  ;;  %1819 = vmatprep.subr.bf16.mxu1 %v1919_v4 }
 0x205   :  { %1705 = vmatprep.mubr.msk.f32.mxu1 %vm1920_vm9, %v1917_v57 }
 0x207   :  { %1800 = vmatpush3.bf16.msra.mxu0 %v1799_v12  ;;  %1821 = vmatpush3.bf16.msk.msra.mxu1 %vm2076_vm0, %v1916_v55 }
 0x208   :  { %1801 = vmatprep.subr.bf16.mxu0 %v1919_v4  ;;  %1822 = vmatprep.subr.bf16.mxu1 %v1919_v4 }
 0x20b   :  { %1803 = vmatpush3.bf16.msra.mxu0 %v1802_v17  ;;  %1824 = vmatpush3.bf16.msk.msra.mxu1 %vm2093_vm3, %v1916_v55 }
 0x20c   :  { %1825 = vmatprep.subr.bf16.mxu1 %v1919_v4 }
 0x20e   :  { %1668 = vmatmul.mubr.f32.vlgmr.msra.gmra.mrb[4].mxu0 %v2059_v7 }
 0x20f   :  { %1827 = vmatpush3.bf16.msk.msra.mxu1 %vm2105_vm6, %v1916_v55 }
 0x210   :  { %1828 = vmatprep.subr.bf16.mxu1 %v1919_v4 }
 0x212   :  { %1706 = vmatmul.mubr.f32.vlgmr.msra.gmra.mrb[8].mxu1 %v900_v26 }
 0x213   :  { %1830 = vmatpush3.bf16.msra.mxu1 %v2084_v30  ;;  %1724 = vmatprep.mubr.msk.f32.mxu1 %vm1920_vm9, %v1917_v57 }
 0x214   :  { %1831 = vmatprep.subr.bf16.mxu1 %v1919_v4 }
 0x217   :  { %1833 = vmatpush3.bf16.msra.mxu1 %v2097_v46 }
 0x218   :  { %1834 = vmatprep.subr.bf16.mxu1 %v1919_v4 }
 0x21b   :  { %1836 = vmatpush3.bf16.msra.mxu1 %v1835_v3 }
 0x21c   :  { %1837 = vmatprep.subr.bf16.mxu1 %v1919_v4 }
 0x21f   :  { %1839 = vmatpush3.bf16.msra.mxu1 %v1838_v15 }
 0x220   :  { %1840 = vmatprep.subr.bf16.mxu1 %v1919_v4 }
 0x222   :  { %1725 = vmatmul.mubr.f32.vlgmr.msra.gmra.mrb[8].mxu1 %v2059_v7 }
 0x223   :  { %1842 = vmatpush3.bf16.msk.msra.mxu1 %vm2063_vm13, %v1916_v55  ;;  %1743 = vmatprep.mubr.msk.f32.mxu1 %vm1920_vm9, %v1917_v57 }
 0x224   :  { %1843 = vmatprep.subr.bf16.mxu1 %v1919_v4 }
 0x227   :  { %1845 = vmatpush3.bf16.msk.msra.mxu1 %vm2076_vm0, %v1916_v55 }
 0x228   :  { %1846 = vmatprep.subr.bf16.mxu1 %v1919_v4 }
 0x22b   :  { %1848 = vmatpush3.bf16.msk.msra.mxu1 %vm2093_vm3, %v1916_v55 }
 0x22c   :  { %1849 = vmatprep.subr.bf16.mxu1 %v1919_v4 }
 0x22f   :  { %1851 = vmatpush3.bf16.msk.msra.mxu1 %vm2105_vm6, %v1916_v55 }
 0x232   :  { %1744 = vmatmul.mubr.f32.vlgmr.msra.gmra.mrb[8].mxu1 %v2059_v7 }
 0x2e1   :  { %v1015_v57 = vpop.f32.mrb[4].mxu0 }
 0x2e2   :  { %v1669_v13 = vpop.f32.mrb[5].mxu0  ;;  %v1852_v14 = vadd.f32 -0.84729785, %v1015_v57 }
 0x305   :  { %v1358_v18 = vpop.f32.mrb[8].mxu1 }
 0x306   :  { %v1853_v19 = vadd.f32 %v1852_v14, %v1358_v18  ;;  %v1745_v20 = vpop.f32.mrb[9].mxu1 }
 0x308   :  { %v1431_v21 = vmul.f32 -1.442695, %v1853_v19 }
 0x30a   :  { %1888 = vpow2.f32 %v1431_v21 }
 0x314   :  { %v1889_v22 = vpop.eup %1888 }
 0x315   :  { %v1365_v23 = vadd.f32 1.0, %v1889_v22 }
 0x317   :  { %1890 = vrcp.f32 %v1365_v23 }
 0x321   :  { %v1891_v4 = vpop.eup %1890 }
 0x322   :  { %1368 = vst [vmem:[#allocation2] sm:$0x1] %v1891_v4 }
 0x323   :  { %1903 = shalt.err (!%p1900_p4)
}
 0x324   :  { %s1904_s23 = scalar_lea.hbm %s2186_s4, 16 }
 0x325   :  { %p1905_p5 = scmp.ne.s32.totalorder %s2186_s4, %s1904_s23  ;;  %p1908_p6 = scmp.lt.u32.totalorder %s1904_s23, %s2186_s4 }
 0x327   :  { %p1910_p7 = pnand %p1908_p6, %p1905_p5 }
 0x329   :  { %1913 = shalt.err (!%p1910_p7)
}
 0x32a   :  { %1378 = dma.vmem_to_hbm [thread:$0]  %s1376_s3, 16, %s2186_s4, [#allocation3]  }
 0x32b   :  { %1914 = dma.done.wait [#allocation3], 16  }
 0x32c   :  { %1915 = vsyncadd [#allocation3], 4294967280 }
 0x32d   :  { %1382 = vsyncpa [#allocation3], 1 }

</bundles_post_ra>
